<compile_context>
chip_gen: v7x
topology: tpu7x:2x2x1
jax: 0.10.0
libtpu: 0.0.40
codegen_flags: <defaults>
</compile_context>

<pallas_src>
import jax
import jax.numpy as jnp
from jax.experimental import pallas as pl
from jax.experimental.pallas import tpu as pltpu


def _hw_transpose_kernel(x_ref, o_ref):
    # x_ref: (TC, TWs, Hs)  ->  o_ref: (TC, Hs, TWs)
    # Batched swap of the trailing two dims (canonical Mosaic vxpose path).
    o_ref[...] = jnp.swapaxes(x_ref[...], -1, -2)


def contract(x, gain=2):
    """Pallas Contract: (N, C, H, W) -> (N, C*s*s, H//s, W//s)."""
    N, C, H, W = x.shape
    s = int(gain)
    if s == 1:
        return x
    assert H % s == 0 and W % s == 0, "H and W must be divisible by gain"
    Hs, Ws = H // s, W // s
    K = C * s * s
    itemsize = jnp.dtype(x.dtype).itemsize

    # One fused XLA transpose (single HBM round trip):
    #   xp[n, (i*s+j)*C + c, wb, hb] = x[n, c, hb*s+i, wb*s+j]
    # The kernel then only has to swap the trailing spatial dims to produce
    # the NCHW output directly (no output-side XLA transpose).
    xp = x.reshape(N, C, Hs, s, Ws, s)
    xp = jnp.transpose(xp, (0, 3, 5, 1, 4, 2))        # (N, s, s, C, Ws, Hs)
    xp = xp.reshape(N, K, Ws, Hs)

    # ---------------- per-chip tile sizing ----------------
    try:
        vmem_cap = int(pltpu.get_tpu_info().vmem_capacity_bytes)
    except Exception:  # unknown chip / emulator: assume the smallest (v7x, 64 MiB)
        vmem_cap = 64 * 1024 * 1024
    pair_budget = vmem_cap // 8          # in+out tile pair target (double-buffered
                                         # + transpose temporaries stay well under cap)

    def pair_bytes(tc, tws):
        return 2 * tc * tws * Hs * itemsize

    TWs = Ws
    TC = max(1, min(K, pair_budget // max(pair_bytes(1, Ws), 1)))
    if pair_bytes(1, Ws) > pair_budget and Ws >= 256:
        # One full channel plane already exceeds the budget: tile Ws in
        # 128-lane chunks (legal as the output lane dim / input sublane dim).
        TC = 1
        tw = pair_budget // max(2 * Hs * itemsize, 1)
        TWs = min((Ws // 128) * 128, max(128, (tw // 128) * 128))
        # TODO(synk): an additional Hs tiling axis would be needed for truly
        # absurd spatial sizes; not added to keep the grid simple.

    # v7x megacore balance: make sure there are at least a few parallel tiles.
    while N * pl.cdiv(K, TC) * pl.cdiv(Ws, TWs) < 4 and TC > 1:
        TC = max(1, TC // 2)

    tile_pair = pair_bytes(TC, TWs)
    vmem_limit = int(min(int(vmem_cap * 0.9),
                         max(16 * 1024 * 1024, 4 * tile_pair)))

    grid = (N, pl.cdiv(K, TC), pl.cdiv(Ws, TWs))

    out = pl.pallas_call(
        _hw_transpose_kernel,
        out_shape=jax.ShapeDtypeStruct((N, K, Hs, Ws), x.dtype),
        grid=grid,
        in_specs=[pl.BlockSpec((None, TC, TWs, Hs),
                               lambda n, c, w: (n, c, w, 0))],
        out_specs=pl.BlockSpec((None, TC, Hs, TWs),
                               lambda n, c, w: (n, c, 0, w)),
        compiler_params=pltpu.CompilerParams(
            dimension_semantics=("parallel", "parallel", "parallel"),
            vmem_limit_bytes=vmem_limit),
        cost_estimate=pl.CostEstimate(
            flops=0,
            transcendentals=0,
            bytes_accessed=int(2 * N * C * H * W * itemsize)),
    )(xp)

    return out


def contract_ref(x, gain=2):
    """Pure-JAX reference mirroring the PyTorch view/permute/view exactly."""
    N, C, H, W = x.shape
    s = gain
    y = x.reshape(N, C, H // s, s, W // s, s)
    y = jnp.transpose(y, (0, 3, 5, 1, 2, 4))
    return y.reshape(N, C * s * s, H // s, W // s)


if __name__ == "__main__":
    key = jax.random.PRNGKey(0)
    x = jax.random.normal(key, (2, 4, 16, 16), dtype=jnp.float32)  # NCHW

    out = jax.jit(lambda v: contract(v, gain=2))(x)
    out = jax.block_until_ready(out)

    ref = contract_ref(x, gain=2)
    assert out.shape == (2, 16, 8, 8), out.shape
    assert out.dtype == x.dtype
    assert bool(jnp.array_equal(out, ref)), "Pallas Contract mismatch vs reference"

    print("KERNEL_OK")
</pallas_src>

<mosaic_0001>
module attributes {stable_mosaic.version = 11 : i64} {
  func.func @_hw_transpose_kernel(%arg0: i32, %arg1: i32, %arg2: i32, %arg3: memref<1x8x8x8xf32, #tpu.memory_space<vmem>>, %arg4: memref<1x8x8x8xf32, #tpu.memory_space<vmem>>) attributes {dimension_semantics = [#tpu.dimension_semantics<parallel>, #tpu.dimension_semantics<parallel>, #tpu.dimension_semantics<parallel>], iteration_bounds = array<i64: 2, 2, 1>, scalar_prefetch = 0 : i64, scratch_operands = 0 : i64, tpu.core_type = #tpu.core_type<tc>, window_params = [{transform_indices = @transform_0, window_bounds = array<i64: 1, 8, 8, 8>}, {transform_indices = @transform_1, window_bounds = array<i64: 1, 8, 8, 8>}]} {
    %c0 = arith.constant 0 : index
    %c0_0 = arith.constant 0 : index
    %c0_1 = arith.constant 0 : index
    %c0_2 = arith.constant 0 : index
    %0 = vector.load %arg3[%c0, %c0_0, %c0_1, %c0_2] : memref<1x8x8x8xf32, #tpu.memory_space<vmem>>, vector<1x8x8x8xf32>
    %1 = vector.shape_cast %0 : vector<1x8x8x8xf32> to vector<8x8x8xf32>
    %2 = tpu.transpose %1, [0, 2, 1] : vector<8x8x8xf32> -> vector<8x8x8xf32>
    %c0_3 = arith.constant 0 : index
    %c0_4 = arith.constant 0 : index
    %c0_5 = arith.constant 0 : index
    %c0_6 = arith.constant 0 : index
    %3 = vector.load %arg4[%c0_3, %c0_4, %c0_5, %c0_6] : memref<1x8x8x8xf32, #tpu.memory_space<vmem>>, vector<1x8x8x8xf32>
    %4 = vector.shape_cast %3 : vector<1x8x8x8xf32> to vector<8x8x8xf32>
    %5 = vector.shape_cast %2 : vector<8x8x8xf32> to vector<1x8x8x8xf32>
    tpu.vector_store %arg4[%c0_3, %c0_4, %c0_5, %c0_6], %5 {strides = array<i32>} : memref<1x8x8x8xf32, #tpu.memory_space<vmem>>, vector<1x8x8x8xf32>,
    return
  }
  func.func @transform_0(%arg0: i32, %arg1: i32, %arg2: i32) -> (i32, i32, i32, i32) {
    %c0_i32 = arith.constant 0 : i32
    %c0_i32_0 = arith.constant 0 : i32
    return %arg0, %arg1, %arg2, %c0_i32 : i32, i32, i32, i32
  }
  func.func @transform_1(%arg0: i32, %arg1: i32, %arg2: i32) -> (i32, i32, i32, i32) {
    %c0_i32 = arith.constant 0 : i32
    %c0_i32_0 = arith.constant 0 : i32
    return %arg0, %arg1, %c0_i32, %arg2 : i32, i32, i32, i32
  }
}

</mosaic_0001>

<bundles_post_ra>
// kernel: _lambda_.1
= control target key start
LH: loop header
LB: loop body
LE: loop exit
PB: predicated region body
PF: predicated region fallthrough
CT: control target
= control target key end

     0   :  { %s665_s6 = smov 0   ;;  %s667_s7 = smov 0   ;;  %s724_s0 = inlined_call_operand.vmem [shape: f32[2,16,8,8], index: 0, kind: input, shape index: {}]   ;;  %s725_s1 = inlined_call_operand.vmem [shape: f32[2,16,8,8], index: 1, kind: output, shape index: {}]  }
   0x1   :  { %s669_s8 = smov 0   ;;  %s671_s9 = smov 0  }
   0x2   :  { %s673_s10 = smov 0  }
   0x3 LB: > { %s26_s11 = sadd.s32 1, %s645_s8  ;;  %s30_s12 = sadd.s32 1, %s649_s9  ;;  %s653_s10 = sphi %s673_s10, %s11_s10   ;;  %s649_s9 = sphi %s671_s9, %s729_s9   ;;  %s645_s8 = sphi %s669_s8, %s728_s8   ;;  %s641_s7 = sphi %s667_s7, %s727_s7   ;;  %s637_s6 = sphi %s665_s6, %s726_s6  }
   0x4   : > { %p28_p0 = scmp.ge.s32.totalorder %s26_s11, 2  ;;  %p565_p1 = scmp.ge.s32.totalorder %s653_s10, 1 }
   0x5   : > { %p122_p2 = scmp.lt.s32.totalorder %s653_s10, 5 }
   0x6   : > { %s731_s11 = smov (%p28_p0, %s26_s11), 0  ;;  %s733_s12 = smov (!%p28_p0, %s30_s12), %s649_s9 }
   0x7   : > { %p123_p3 = pnand %p565_p1, %p122_p2  ;;  %p32_p4 = scmp.ge.s32.totalorder %s733_s12, 2 }
   0x8   : > { %s566_s13 = sshll.u32 (!%p123_p3), %s637_s6, 3  ;;  %p157_p5 = scmp.lt.s32.totalorder (!%p123_p3), %s641_s7, 1  ;;  %vm446_vm0 = vcmask (!%p123_p3), 64512  }
   0x9   : > { %s735_s12 = smov (%p32_p4, %s733_s12), 0  ;;  %126 = sbr.rel (%p123_p3) target bundleno = 164 (0xa4), region = 24 }
   0xa   : > { %p159_p6 = scmp.lt.s32.totalorder (!%p123_p3), %s566_s13, 15 }
  0x10   : > { %s737_s7 = smov (!%p157_p5, %s641_s7), 1  ;;  %s739_s13 = smov (!%p159_p6, %s566_s13), 15 }
  0x11   : > { %s567_s14 = sshll.u32 %s737_s7, 4 }
  0x12   : > { %s165_s15 = sadd.s32 %s567_s14, %s739_s13 }
  0x13   : > { %s568_s16 = sshll.u32 %s165_s15, 3 }
  0x14   : > { %s167_s19 = scalar_lea.vmem %s724_s0, %s568_s16  ;;  %s180_s22 = scalar_lea.vmem %s725_s1, %s568_s16 }
  0x15   : > { %v184_v0 = vld [vmem:[%s167_s19 + $0x10] sm:$0xff]  ;;  %v182_v1 = vld [vmem:[%s167_s19] sm:$0xff]  ;;  %v185_v2 = vld [vmem:[%s167_s19 + $0x18] sm:$0xff] }
  0x16   : > { %254 = vxpose.xlu1.b32.start.end [1/1] (short) (narrow) %v184_v0, 8  ;;  %190 = vxpose.xlu0.b32.start.end [1/1] (short) (narrow) %v182_v1, 8  ;;  %v183_v3 = vld [vmem:[%s167_s19 + $0x8] sm:$0xff]  ;;  %v186_v5 = vld [vmem:[%s167_s19 + $0x20] sm:$0xff]  ;;  %v189_v6 = vld [vmem:[%s167_s19 + $0x38] sm:$0xff] }
  0x17   : > { %v187_v4 = vld [vmem:[%s167_s19 + $0x28] sm:$0xff]  ;;  %v188_v7 = vld [vmem:[%s167_s19 + $0x30] sm:$0xff] }
  0x1a   : > { %286 = vxpose.xlu1.b32.start.end [1/1] (short) (narrow) %v185_v2, 8  ;;  %222 = vxpose.xlu0.b32.start.end [1/1] (short) (narrow) %v183_v3, 8 }
  0x1e   : > { %350 = vxpose.xlu1.b32.start.end [1/1] (short) (narrow) %v187_v4, 8  ;;  %318 = vxpose.xlu0.b32.start.end [1/1] (short) (narrow) %v186_v5, 8 }
  0x22   : > { %414 = vxpose.xlu1.b32.start.end [1/1] (short) (narrow) %v189_v6, 8  ;;  %382 = vxpose.xlu0.b32.start.end [1/1] (short) (narrow) %v188_v7, 8 }
  0x96   : > { %v270_v8 = vpop.trf.xlu1  ;;  %v206_v9 = vpop.trf.xlu0 }
  0x97   : > { %449 = vst.msk [vmem:[%s180_s22 + $0x10] sm:$0xff] %vm446_vm0, %v270_v8  ;;  %447 = vst.msk [vmem:[%s180_s22] sm:$0xff] %vm446_vm0, %v206_v9 }
  0x9a   : > { %v302_v10 = vpop.trf.xlu1  ;;  %v238_v11 = vpop.trf.xlu0 }
  0x9b   : > { %450 = vst.msk [vmem:[%s180_s22 + $0x18] sm:$0xff] %vm446_vm0, %v302_v10  ;;  %448 = vst.msk [vmem:[%s180_s22 + $0x8] sm:$0xff] %vm446_vm0, %v238_v11 }
  0x9e   : > { %v366_v12 = vpop.trf.xlu1  ;;  %v334_v13 = vpop.trf.xlu0 }
  0x9f   : > { %452 = vst.msk [vmem:[%s180_s22 + $0x28] sm:$0xff] %vm446_vm0, %v366_v12  ;;  %451 = vst.msk [vmem:[%s180_s22 + $0x20] sm:$0xff] %vm446_vm0, %v334_v13 }
  0xa2   : > { %v430_v14 = vpop.trf.xlu1  ;;  %v398_v15 = vpop.trf.xlu0 }
  0xa3   : > { %454 = vst.msk [vmem:[%s180_s22 + $0x38] sm:$0xff] %vm446_vm0, %v430_v14  ;;  %453 = vst.msk [vmem:[%s180_s22 + $0x30] sm:$0xff] %vm446_vm0, %v398_v15 }
  0xa4 PF: > { %s11_s10 = sadd.s32 1, %s653_s10   ;;  %s726_s6 = smov %s645_s8 }
  0xa5   : > { %p8_p7 = scmp.ge.s32.totalorder %s11_s10, 6   ;;  %s727_s7 = smov %s649_s9 }
  0xa6   : > { %s728_s8 = smov %s731_s11  ;;  %s729_s9 = smov %s735_s12 }
  0xa7   :  { %10 = sbr.rel (!%p8_p7) target bundleno = 3 (0x3), region = 54 }

</bundles_post_ra>
